<compile_context>
chip_gen: v7x
topology: tpu7x:2x2x1
jax: 0.10.0
libtpu: 0.0.40
codegen_flags: <defaults>
</compile_context>

<pallas_src>
import functools

import jax
import jax.numpy as jnp
from jax.experimental import pallas as pl
from jax.experimental.pallas import tpu as pltpu

_LANE = 128


def _round_up(x, m):
    return ((x + m - 1) // m) * m


def _cdiv(a, b):
    return (a + b - 1) // b


def actor_kernel(obs_ref, w1_ref, b1_ref, w2_ref, b2_ref,
                 w3o_ref, w3h1_ref, w3h2_ref, b3_ref, out_ref,
                 *, act_limit):
    """Feature-major tile: obs_ref (obs_dim, TB), out_ref (act_dim, TB)."""
    mm_dtype = w1_ref.dtype                 # bf16 (default) or f32

    obs_t = obs_ref[...]                    # (obs_dim, TB) f32
    obs_mm = obs_t.astype(mm_dtype)         # hoisted cast: reused for W1 and W3o dots

    # Hidden layer 1: h1ᵀ = relu(W1 · obsᵀ + b1)   (f32 accumulate + elementwise)
    h1 = jnp.dot(w1_ref[...], obs_mm,
                 preferred_element_type=jnp.float32) + b1_ref[...]
    h1 = jnp.maximum(h1, 0.0)
    h1_mm = h1.astype(mm_dtype)             # hoisted cast: reused for W2 and W3h1 dots

    # Hidden layer 2: h2ᵀ = relu(W2 · h1ᵀ + b2)
    h2 = jnp.dot(w2_ref[...], h1_mm,
                 preferred_element_type=jnp.float32) + b2_ref[...]
    h2 = jnp.maximum(h2, 0.0)
    h2_mm = h2.astype(mm_dtype)

    # Final layer on cat([obs, h1, h2]) == sum of three partial matmuls against
    # the column-split of W3 (same order as the PyTorch concat).
    pre = (jnp.dot(w3o_ref[...], obs_mm, preferred_element_type=jnp.float32)
           + jnp.dot(w3h1_ref[...], h1_mm, preferred_element_type=jnp.float32)
           + jnp.dot(w3h2_ref[...], h2_mm, preferred_element_type=jnp.float32)
           + b3_ref[...])

    # tanh -> EUP slot; scale + lane-dense store -> VPU / vst.
    out_ref[...] = (act_limit * jnp.tanh(pre)).astype(out_ref.dtype)


def concat_skip_mlp_actor(obs, params, act_limit, *,
                          target_rows_per_step=8192,
                          matmul_dtype=jnp.bfloat16):
    """obs: (B, obs_dim) f32.  params: dict of PyTorch-convention weights.

    target_rows_per_step: desired batch rows per grid step (amortizes per-step
                          overhead; rounded to a multiple of 128 lanes).
    matmul_dtype:         dtype of the MXU operands (bf16 default; jnp.float32
                          for bit-faithful numerics, recommended on v5e).
    """
    B, obs_dim = obs.shape
    w1, b1 = params["w1"], params["b1"]      # (h1, obs_dim), (h1,)
    w2, b2 = params["w2"], params["b2"]      # (h2, h1),      (h2,)
    w3, b3 = params["w3"], params["b3"]      # (act_dim, obs_dim+h1+h2), (act_dim,)
    h1_dim = w1.shape[0]
    h2_dim = w2.shape[0]
    act_dim = w3.shape[0]

    if B == 0:                               # empty-batch guard (no kernel launch)
        return jnp.zeros((0, act_dim), jnp.float32)

    # Weights stay in PyTorch (out, in) layout -> they are the LHS of each
    # feature-major dot.  Split W3 along its input axis in concat order
    # [obs | h1 | h2]; cast MXU operands to matmul_dtype in the wrapper so the
    # resident VMEM copy is already narrow.
    w1m = w1.astype(matmul_dtype)                                  # (h1, obs)
    w2m = w2.astype(matmul_dtype)                                  # (h2, h1)
    w3o = w3[:, :obs_dim].astype(matmul_dtype)                     # (act, obs)
    w3h1 = w3[:, obs_dim:obs_dim + h1_dim].astype(matmul_dtype)    # (act, h1)
    w3h2 = w3[:, obs_dim + h1_dim:].astype(matmul_dtype)           # (act, h2)

    # Biases stay f32, shaped (N, 1) so they broadcast across the batch lanes.
    b1c = b1.reshape(h1_dim, 1).astype(jnp.float32)
    b2c = b2.reshape(h2_dim, 1).astype(jnp.float32)
    b3c = b3.reshape(act_dim, 1).astype(jnp.float32)

    # --- Batch tiling on the lane axis ---------------------------------------
    n_steps = max(1, _cdiv(B, target_rows_per_step))
    if B >= 2 * _LANE:
        n_steps = max(n_steps, 2)            # v7x: keep both TensorCores busy
    TB = _round_up(_cdiv(B, n_steps), _LANE)
    B_pad = _round_up(B, TB)
    grid = (B_pad // TB,)

    # Feature-major input (obs_dim, B_pad); padded rows are zeros, sliced off later.
    obs_t = jnp.pad(obs.astype(jnp.float32), ((0, B_pad - B), (0, 0))).T

    obs_spec = pl.BlockSpec((obs_dim, TB), lambda i: (0, i))
    out_spec = pl.BlockSpec((act_dim, TB), lambda i: (0, i))

    mm_bytes = jnp.dtype(matmul_dtype).itemsize
    weight_elems = (obs_dim * h1_dim + h1_dim * h2_dim
                    + (obs_dim + h1_dim + h2_dim) * act_dim)
    resident_bytes = weight_elems * mm_bytes + (h1_dim + h2_dim + act_dim) * 4

    # Resident weights never change across grid steps; single-buffer them once the
    # resident set is big enough for default double-buffering to pressure VMEM
    # (v7x: 64 MiB).  At small sizes, leave the default pipelining untouched.
    single_buffer = resident_bytes > (8 << 20)

    def resident(arr):
        idx = lambda i: (0,) * arr.ndim      # constant block -> fetched once
        if single_buffer:
            return pl.BlockSpec(arr.shape, idx, pipeline_mode=pl.Buffered(1))
        return pl.BlockSpec(arr.shape, idx)

    # Explicit VMEM budget (scoped defaults are only 16 MiB v5e / 32 MiB v6e,v7x).
    io_tiles = 2 * (obs_dim + act_dim) * TB * 4            # double-buffered obs/out
    interm = 2 * (h1_dim + h2_dim + act_dim) * TB * 4      # f32 activations + casts
    need = (1 if single_buffer else 2) * resident_bytes + io_tiles + interm
    vmem_limit = int(min(max(2 * need, 32 << 20), 64 << 20))

    cost = pl.CostEstimate(
        flops=2 * B_pad * weight_elems,
        transcendentals=B_pad * act_dim,
        bytes_accessed=(B_pad * (obs_dim + act_dim) * 4 + resident_bytes),
    )

    kernel = functools.partial(actor_kernel, act_limit=float(act_limit))

    out_t = pl.pallas_call(
        kernel,
        out_shape=jax.ShapeDtypeStruct((act_dim, B_pad), jnp.float32),
        grid=grid,
        in_specs=[obs_spec,
                  resident(w1m), resident(b1c),
                  resident(w2m), resident(b2c),
                  resident(w3o), resident(w3h1), resident(w3h2),
                  resident(b3c)],
        out_specs=out_spec,
        compiler_params=pltpu.CompilerParams(
            dimension_semantics=("parallel",),
            vmem_limit_bytes=vmem_limit),
        cost_estimate=cost,
    )(obs_t, w1m, b1c, w2m, b2c, w3o, w3h1, w3h2, b3c)

    return out_t[:, :B].T                    # back to (B, act_dim)


def init_params(key, obs_dim, act_dim, hidden_sizes):
    """Deterministic init mirroring nn.Linear's U(-1/sqrt(fan_in), 1/sqrt(fan_in))."""
    h1, h2 = hidden_sizes
    concat_in = obs_dim + h1 + h2
    keys = jax.random.split(key, 6)

    def lin(kw, kb, fan_in, fan_out):
        bound = 1.0 / jnp.sqrt(jnp.float32(fan_in))
        w = jax.random.uniform(kw, (fan_out, fan_in), jnp.float32, -bound, bound)
        b = jax.random.uniform(kb, (fan_out,), jnp.float32, -bound, bound)
        return w, b

    w1, b1 = lin(keys[0], keys[1], obs_dim, h1)
    w2, b2 = lin(keys[2], keys[3], h1, h2)
    w3, b3 = lin(keys[4], keys[5], concat_in, act_dim)
    return {"w1": w1, "b1": b1, "w2": w2, "b2": b2, "w3": w3, "b3": b3}


def reference_forward(obs, params, act_limit):
    h1 = jnp.maximum(obs @ params["w1"].T + params["b1"], 0.0)
    h2 = jnp.maximum(h1 @ params["w2"].T + params["b2"], 0.0)
    cat = jnp.concatenate([obs, h1, h2], axis=1)
    return act_limit * jnp.tanh(cat @ params["w3"].T + params["b3"])


if __name__ == "__main__":
    obs_dim, act_dim = 16, 8
    hidden_sizes = [32, 32]
    act_limit = 1.5

    key = jax.random.PRNGKey(0)
    k_obs, k_par, k_obs2 = jax.random.split(key, 3)
    params = init_params(k_par, obs_dim, act_dim, hidden_sizes)

    # --- Test 1: tiny batch, single grid step, f32 MXU operands, strict tol. ---
    obs = jax.random.normal(k_obs, (2, obs_dim), jnp.float32)
    out = concat_skip_mlp_actor(obs, params, act_limit,
                                matmul_dtype=jnp.float32)
    out = jax.block_until_ready(out)
    ref = reference_forward(obs, params, act_limit)
    assert out.shape == (2, act_dim)
    assert jnp.allclose(out, ref, atol=1e-5, rtol=1e-5), "f32 mismatch vs reference"

    # --- Test 2: non-multiple batch exercising a multi-step grid + padding, bf16.
    obs2 = jax.random.normal(k_obs2, (300, obs_dim), jnp.float32)
    out2 = concat_skip_mlp_actor(obs2, params, act_limit,
                                 matmul_dtype=jnp.bfloat16)
    out2 = jax.block_until_ready(out2)
    ref2 = reference_forward(obs2, params, act_limit)
    assert out2.shape == (300, act_dim)
    assert jnp.allclose(out2, ref2, atol=5e-2, rtol=5e-2), "bf16 mismatch vs reference"

    # --- Test 3: empty-batch guard (no kernel launch). --------------------------
    out0 = concat_skip_mlp_actor(jnp.zeros((0, obs_dim), jnp.float32),
                                 params, act_limit)
    assert out0.shape == (0, act_dim)

    print("KERNEL_OK")
</pallas_src>

<mosaic_0001>
module attributes {stable_mosaic.version = 11 : i64} {
  func.func @actor_kernel(%arg0: i32, %arg1: memref<16x128xf32, #tpu.memory_space<vmem>>, %arg2: memref<32x16xf32, #tpu.memory_space<vmem>>, %arg3: memref<32x1xf32, #tpu.memory_space<vmem>>, %arg4: memref<32x32xf32, #tpu.memory_space<vmem>>, %arg5: memref<32x1xf32, #tpu.memory_space<vmem>>, %arg6: memref<8x16xf32, #tpu.memory_space<vmem>>, %arg7: memref<8x32xf32, #tpu.memory_space<vmem>>, %arg8: memref<8x32xf32, #tpu.memory_space<vmem>>, %arg9: memref<8x1xf32, #tpu.memory_space<vmem>>, %arg10: memref<8x128xf32, #tpu.memory_space<vmem>>) attributes {dimension_semantics = [#tpu.dimension_semantics<parallel>], iteration_bounds = array<i64: 1>, scalar_prefetch = 0 : i64, scratch_operands = 0 : i64, tpu.core_type = #tpu.core_type<tc>, window_params = [{transform_indices = @transform_0, window_bounds = array<i64: 16, 128>}, {pipeline_mode = #tpu.pipeline_mode<synchronous>, transform_indices = @transform_1, window_bounds = array<i64: 32, 16>}, {pipeline_mode = #tpu.pipeline_mode<synchronous>, transform_indices = @transform_2, window_bounds = array<i64: 32, 1>}, {pipeline_mode = #tpu.pipeline_mode<synchronous>, transform_indices = @transform_3, window_bounds = array<i64: 32, 32>}, {pipeline_mode = #tpu.pipeline_mode<synchronous>, transform_indices = @transform_4, window_bounds = array<i64: 32, 1>}, {pipeline_mode = #tpu.pipeline_mode<synchronous>, transform_indices = @transform_5, window_bounds = array<i64: 8, 16>}, {pipeline_mode = #tpu.pipeline_mode<synchronous>, transform_indices = @transform_6, window_bounds = array<i64: 8, 32>}, {pipeline_mode = #tpu.pipeline_mode<synchronous>, transform_indices = @transform_7, window_bounds = array<i64: 8, 32>}, {pipeline_mode = #tpu.pipeline_mode<synchronous>, transform_indices = @transform_8, window_bounds = array<i64: 8, 1>}, {transform_indices = @transform_9, window_bounds = array<i64: 8, 128>}]} {
    %c0 = arith.constant 0 : index
    %c0_0 = arith.constant 0 : index
    %0 = vector.load %arg1[%c0, %c0_0] : memref<16x128xf32, #tpu.memory_space<vmem>>, vector<16x128xf32>
    %c0_1 = arith.constant 0 : index
    %c0_2 = arith.constant 0 : index
    %1 = vector.load %arg2[%c0_1, %c0_2] : memref<32x16xf32, #tpu.memory_space<vmem>>, vector<32x16xf32>
    %cst = arith.constant dense<0.000000e+00> : vector<32x128xf32>
    %2 = tpu.matmul %1, %0, %cst {dimension_numbers = #tpu.dot_dimension_numbers<[1], [0], [0], [1], [0, 0, 1, 1], [], []>} : vector<32x16xf32>, vector<16x128xf32>, vector<32x128xf32> -> vector<32x128xf32>
    %c0_3 = arith.constant 0 : index
    %c0_4 = arith.constant 0 : index
    %3 = vector.load %arg3[%c0_3, %c0_4] : memref<32x1xf32, #tpu.memory_space<vmem>>, vector<32x1xf32>
    %4 = vector.broadcast %3 : vector<32x1xf32> to vector<32x128xf32>
    %5 = arith.addf %2, %4 : vector<32x128xf32>
    %cst_5 = arith.constant 0.000000e+00 : f32
    %6 = vector.broadcast %cst_5 : f32 to vector<32x128xf32>
    %7 = arith.maximumf %5, %6 : vector<32x128xf32>
    %c0_6 = arith.constant 0 : index
    %c0_7 = arith.constant 0 : index
    %8 = vector.load %arg4[%c0_6, %c0_7] : memref<32x32xf32, #tpu.memory_space<vmem>>, vector<32x32xf32>
    %cst_8 = arith.constant dense<0.000000e+00> : vector<32x128xf32>
    %9 = tpu.matmul %8, %7, %cst_8 {dimension_numbers = #tpu.dot_dimension_numbers<[1], [0], [0], [1], [0, 0, 1, 1], [], []>} : vector<32x32xf32>, vector<32x128xf32>, vector<32x128xf32> -> vector<32x128xf32>
    %c0_9 = arith.constant 0 : index
    %c0_10 = arith.constant 0 : index
    %10 = vector.load %arg5[%c0_9, %c0_10] : memref<32x1xf32, #tpu.memory_space<vmem>>, vector<32x1xf32>
    %11 = vector.broadcast %10 : vector<32x1xf32> to vector<32x128xf32>
    %12 = arith.addf %9, %11 : vector<32x128xf32>
    %cst_11 = arith.constant 0.000000e+00 : f32
    %13 = vector.broadcast %cst_11 : f32 to vector<32x128xf32>
    %14 = arith.maximumf %12, %13 : vector<32x128xf32>
    %c0_12 = arith.constant 0 : index
    %c0_13 = arith.constant 0 : index
    %15 = vector.load %arg6[%c0_12, %c0_13] : memref<8x16xf32, #tpu.memory_space<vmem>>, vector<8x16xf32>
    %cst_14 = arith.constant dense<0.000000e+00> : vector<8x128xf32>
    %16 = tpu.matmul %15, %0, %cst_14 {dimension_numbers = #tpu.dot_dimension_numbers<[1], [0], [0], [1], [0, 0, 1, 1], [], []>} : vector<8x16xf32>, vector<16x128xf32>, vector<8x128xf32> -> vector<8x128xf32>
    %c0_15 = arith.constant 0 : index
    %c0_16 = arith.constant 0 : index
    %17 = vector.load %arg7[%c0_15, %c0_16] : memref<8x32xf32, #tpu.memory_space<vmem>>, vector<8x32xf32>
    %cst_17 = arith.constant dense<0.000000e+00> : vector<8x128xf32>
    %18 = tpu.matmul %17, %7, %cst_17 {dimension_numbers = #tpu.dot_dimension_numbers<[1], [0], [0], [1], [0, 0, 1, 1], [], []>} : vector<8x32xf32>, vector<32x128xf32>, vector<8x128xf32> -> vector<8x128xf32>
    %19 = arith.addf %16, %18 : vector<8x128xf32>
    %c0_18 = arith.constant 0 : index
    %c0_19 = arith.constant 0 : index
    %20 = vector.load %arg8[%c0_18, %c0_19] : memref<8x32xf32, #tpu.memory_space<vmem>>, vector<8x32xf32>
    %cst_20 = arith.constant dense<0.000000e+00> : vector<8x128xf32>
    %21 = tpu.matmul %20, %14, %cst_20 {dimension_numbers = #tpu.dot_dimension_numbers<[1], [0], [0], [1], [0, 0, 1, 1], [], []>} : vector<8x32xf32>, vector<32x128xf32>, vector<8x128xf32> -> vector<8x128xf32>
    %22 = arith.addf %19, %21 : vector<8x128xf32>
    %c0_21 = arith.constant 0 : index
    %c0_22 = arith.constant 0 : index
    %23 = vector.load %arg9[%c0_21, %c0_22] : memref<8x1xf32, #tpu.memory_space<vmem>>, vector<8x1xf32>
    %24 = vector.broadcast %23 : vector<8x1xf32> to vector<8x128xf32>
    %25 = arith.addf %22, %24 : vector<8x128xf32>
    %26 = math.tanh %25 : vector<8x128xf32>
    %cst_23 = arith.constant 1.500000e+00 : f32
    %27 = vector.broadcast %cst_23 : f32 to vector<8x128xf32>
    %28 = arith.mulf %27, %26 : vector<8x128xf32>
    %c0_24 = arith.constant 0 : index
    %c0_25 = arith.constant 0 : index
    %29 = vector.load %arg10[%c0_24, %c0_25] : memref<8x128xf32, #tpu.memory_space<vmem>>, vector<8x128xf32>
    tpu.vector_store %arg10[%c0_24, %c0_25], %28 {strides = array<i32>} : memref<8x128xf32, #tpu.memory_space<vmem>>, vector<8x128xf32>,
    return
  }
  func.func @transform_0(%arg0: i32) -> (i32, i32) {
    %c0_i32 = arith.constant 0 : i32
    %c0_i32_0 = arith.constant 0 : i32
    return %c0_i32, %arg0 : i32, i32
  }
  func.func @transform_1(%arg0: i32) -> (i32, i32) {
    %c0_i32 = arith.constant 0 : i32
    %c0_i32_0 = arith.constant 0 : i32
    %c0_i32_1 = arith.constant 0 : i32
    return %c0_i32, %c0_i32_0 : i32, i32
  }
  func.func @transform_2(%arg0: i32) -> (i32, i32) {
    %c0_i32 = arith.constant 0 : i32
    %c0_i32_0 = arith.constant 0 : i32
    %c0_i32_1 = arith.constant 0 : i32
    return %c0_i32, %c0_i32_0 : i32, i32
  }
  func.func @transform_3(%arg0: i32) -> (i32, i32) {
    %c0_i32 = arith.constant 0 : i32
    %c0_i32_0 = arith.constant 0 : i32
    %c0_i32_1 = arith.constant 0 : i32
    return %c0_i32, %c0_i32_0 : i32, i32
  }
  func.func @transform_4(%arg0: i32) -> (i32, i32) {
    %c0_i32 = arith.constant 0 : i32
    %c0_i32_0 = arith.constant 0 : i32
    %c0_i32_1 = arith.constant 0 : i32
    return %c0_i32, %c0_i32_0 : i32, i32
  }
  func.func @transform_5(%arg0: i32) -> (i32, i32) {
    %c0_i32 = arith.constant 0 : i32
    %c0_i32_0 = arith.constant 0 : i32
    %c0_i32_1 = arith.constant 0 : i32
    return %c0_i32, %c0_i32_0 : i32, i32
  }
  func.func @transform_6(%arg0: i32) -> (i32, i32) {
    %c0_i32 = arith.constant 0 : i32
    %c0_i32_0 = arith.constant 0 : i32
    %c0_i32_1 = arith.constant 0 : i32
    return %c0_i32, %c0_i32_0 : i32, i32
  }
  func.func @transform_7(%arg0: i32) -> (i32, i32) {
    %c0_i32 = arith.constant 0 : i32
    %c0_i32_0 = arith.constant 0 : i32
    %c0_i32_1 = arith.constant 0 : i32
    return %c0_i32, %c0_i32_0 : i32, i32
  }
  func.func @transform_8(%arg0: i32) -> (i32, i32) {
    %c0_i32 = arith.constant 0 : i32
    %c0_i32_0 = arith.constant 0 : i32
    %c0_i32_1 = arith.constant 0 : i32
    return %c0_i32, %c0_i32_0 : i32, i32
  }
  func.func @transform_9(%arg0: i32) -> (i32, i32) {
    %c0_i32 = arith.constant 0 : i32
    %c0_i32_0 = arith.constant 0 : i32
    return %c0_i32, %arg0 : i32, i32
  }
}

</mosaic_0001>

<bundles_post_ra>
// kernel: tpu_custom_call.1
= control target key start
LH: loop header
LB: loop body
LE: loop exit
PB: predicated region body
PF: predicated region fallthrough
CT: control target
= control target key end

     0   :  { %vm63_vm0 = vcmask 130048   ;;  %v693_v4 = vmov 0   ;;  %s847_s0 = inlined_call_operand.vmem [shape: f32[16,128], index: 0, kind: input, shape index: {}]   ;;  %s848_s1 = inlined_call_operand.vmem [shape: f32[32,16], index: 1, kind: input, shape index: {}]   ;;  %s849_s2 = inlined_call_operand.vmem [shape: f32[32,1], index: 2, kind: input, shape index: {}]   ;;  %s850_s3 = inlined_call_operand.vmem [shape: f32[32,32], index: 3, kind: input, shape index: {}]   ;;  %s851_s4 = inlined_call_operand.vmem [shape: f32[32,1], index: 4, kind: input, shape index: {}]   ;;  %s852_s5 = inlined_call_operand.vmem [shape: f32[8,16], index: 5, kind: input, shape index: {}]   ;;  %s853_s6 = inlined_call_operand.vmem [shape: f32[8,32], index: 6, kind: input, shape index: {}]   ;;  %s854_s7 = inlined_call_operand.vmem [shape: f32[8,32], index: 7, kind: input, shape index: {}]   ;;  %s855_s8 = inlined_call_operand.vmem [shape: f32[8,1], index: 8, kind: input, shape index: {}]   ;;  %s856_s9 = inlined_call_operand.hbm [shape: f32[8,128], index: 9, kind: output, shape index: {}]  }
   0x1   :  { %v33_v0 = vld [vmem:[%s847_s0] sm:$0xff]  ;;  %v34_v1 = vld [vmem:[%s847_s0 + $0x8] sm:$0xff]  ;;  %665 = vset.pattern.permute.xlu0 %v693_v4  ;;  %666 = vset.pattern.permute.xlu1 %v693_v4  ;;  %v41_v6 = vld [vmem:[%s849_s2 + $0x10] sm:$0xff] }
   0x2   :  { %v35_v2 = vld [vmem:[%s848_s1] sm:$0xff]  ;;  %v757_v3 = vpack.c.bf16 %v34_v1, %v33_v0  ;;  %v36_v7 = vld [vmem:[%s848_s1 + $0x8] sm:$0xff]  ;;  %55 = vperm.xlu1 %666, %v41_v6   ;;  %v37_v9 = vld [vmem:[%s848_s1 + $0x10] sm:$0xff] }
   0x3   :  { %584 = vmatprep.mubr.msk.f32.mxu0 %vm63_vm0, %v35_v2  ;;  %v39_v5 = vld [vmem:[%s849_s2] sm:$0xff]  ;;  %v40_v8 = vld [vmem:[%s849_s2 + $0x8] sm:$0xff]  ;;  %v42_v10 = vld [vmem:[%s849_s2 + $0x18] sm:$0xff] }
   0x4   :  { %634 = vmatprep.subr.bf16.mxu0 %v757_v3  ;;  %45 = vperm.xlu0 %665, %v39_v5  }
   0x5   :  { %636 = vmatpush3.bf16.msra.mxu0 %v757_v3 }
   0x6   :  { %14 = vsyncpa [#allocation3], 0  ;;  %v38_v11 = vld [vmem:[%s848_s1 + $0x18] sm:$0xff]  ;;  %v169_v12 = vld [vmem:[%s851_s4] sm:$0xff]  ;;  %60 = vperm.xlu1 %666, %v42_v10   ;;  %v694_v17 = vmov 0.0|0.0   ;;  %vm193_vm1 = vcmask 261120  }
   0x7   :  { %v170_v13 = vld [vmem:[%s851_s4 + $0x8] sm:$0xff]  ;;  %v171_v14 = vld [vmem:[%s851_s4 + $0x10] sm:$0xff]  ;;  %v172_v15 = vld [vmem:[%s851_s4 + $0x18] sm:$0xff]  ;;  %645 = vmatprep.subr.bf16.mxu0 %v694_v17  ;;  %vm695_vm2 = vmmov 0   ;;  %v696_v40 = vmov 0.0  }
   0x8   :  { %585 = vmatmul.mubr.msk.f32.vlgmr.msra.gmra.mrb[0].mxu0 %vm63_vm0, %v36_v7  ;;  %50 = vperm.xlu0 %665, %v40_v8   ;;  %v518_v16 = vld [vmem:[%s855_s8] sm:$0xff]  ;;  %v166_v37 = vld [vmem:[%s850_s3 + $0x8] sm:$0xff]  ;;  %v167_v38 = vld [vmem:[%s850_s3 + $0x10] sm:$0xff] }
   0x9   :  { %587 = vmatprep.mubr.msk.f32.mxu0 %vm63_vm0, %v37_v9  ;;  %v165_v18 = vld [vmem:[%s850_s3] sm:$0xff]  ;;  %v168_v39 = vld [vmem:[%s850_s3 + $0x18] sm:$0xff] }
   0xa   :  { %180 = vperm.xlu1 %666, %v170_v13   ;;  %598 = vmatprep.mubr.msk.f32.mxu1 %vm193_vm1, %v165_v18  ;;  %v296_v41 = vld [vmem:[%s853_s6] sm:$0xff]  ;;  %s697_s6 = smov [#allocation2]  }
   0xb   :  { %v295_v42 = vld [vmem:[%s852_s5] sm:$0xff]  ;;  %s534_s24 = sshll.u32 %s697_s6, 4  ;;  %s535_s24 = int_to_ptr.vmem [resolvable:$true] %s534_s24 }
   0xc   :  { %588 = vmatmul.mubr.msk.f32.gmra.mrb[2].mxu0 %vm63_vm0, %v38_v11  ;;  %175 = vperm.xlu0 %665, %v169_v12   ;;  %v443_v61 = vld [vmem:[%s854_s7] sm:$0xff]  ;;  %s669_s7 = scalar_lea.vmem %s535_s24, 128  ;;  %p674_p1 = scmp.lt.s32.totalorder %s535_s24, %s535_s24 }
   0xd   :  { %612 = vmatprep.mubr.msk.f32.mxu0 %vm695_vm2, %v696_v40  ;;  %p670_p0 = scmp.ne.s32.totalorder %s535_s24, %s669_s7  ;;  %p675_p2 = scmp.lt.s32.totalorder %s669_s7, %s669_s7 }
   0xe   :  { %190 = vperm.xlu1 %666, %v172_v15  }
   0xf   :  { %p676_p3 = por %p675_p2, %p674_p1 }
  0x10   :  { %185 = vperm.xlu0 %665, %v171_v14  }
  0x11   :  { %p677_p4 = pnand %p676_p3, %p670_p0 }
  0x14   :  { %521 = vperm.xlu0 %665, %v518_v16  }
  0x81   :  { %v56_v20 = vpop.permute.xlu1 %55 }
  0x83   :  { %v46_v19 = vpop.permute.xlu0 %45 }
  0x85   :  { %v61_v27 = vpop.permute.xlu1 %60 }
  0x87   :  { %v51_v21 = vpop.permute.xlu0 %50 }
  0x89   :  { %v181_v43 = vpop.permute.xlu1 %180 }
  0x8b   :  { %v176_v44 = vpop.permute.xlu0 %175 }
  0x8d   :  { %v191_v50 = vpop.permute.xlu1 %190 }
  0x8f   :  { %v186_v53 = vpop.permute.xlu0 %185 }
  0x93   :  { %v522_v6 = vpop.permute.xlu0 %521 }
  0xdb   :  { %v586_v22 = vpop.f32.mrb[0].mxu0 }
  0xdc   :  { %v148_v23 = vadd.f32 %v586_v22, %v51_v21  ;;  %v142_v24 = vpop.f32.mrb[1].mxu0 }
  0xdd   :  { %v143_v25 = vadd.f32 %v142_v24, %v46_v19 }
  0xde   :  { %v162_v26 = vmax.f32 %v148_v23, 0.0 }
  0xdf   :  { %v161_v28 = vmax.f32 %v143_v25, 0.0  ;;  %v589_v29 = vpop.f32.mrb[2].mxu0 }
  0xe0   :  { %v158_v30 = vadd.f32 %v589_v29, %v61_v27  ;;  %v152_v31 = vpop.f32.mrb[3].mxu0 }
  0xe1   :  { %v637_v32 = vpack.c.bf16 %v162_v26, %v161_v28  ;;  %v153_v33 = vadd.f32 %v152_v31, %v56_v20 }
  0xe2   :  { %v164_v34 = vmax.f32 %v158_v30, 0.0 }
  0xe3   :  { %v163_v35 = vmax.f32 %v153_v33, 0.0  ;;  %638 = vmatprep.subr.bf16.mxu1 %v637_v32  ;;  %647 = vmatpush3.bf16.msra.mxu0 %v637_v32 }
  0xe4   :  { %640 = vmatpush3.bf16.msra.mxu1 %v637_v32  ;;  %648 = vmatprep.subr.bf16.mxu0 %v694_v17 }
  0xe5   :  { %v641_v36 = vpack.c.bf16 %v164_v34, %v163_v35 }
  0xe7   :  { %642 = vmatprep.subr.bf16.mxu1 %v641_v36  ;;  %650 = vmatpush3.bf16.msra.mxu0 %v641_v36 }
  0xe8   :  { %644 = vmatpush3.bf16.msra.mxu1 %v641_v36  ;;  %651 = vmatprep.subr.bf16.mxu0 %v694_v17 }
  0xe9   :  { %654 = vmatprep.subr.bf16.mxu1 %v694_v17 }
  0xea   :  { %613 = vmatmul.mubr.msk.f32.vlgmr.msra.gmra.mrb[4].mxu0 %vm193_vm1, %v296_v41 }
  0xeb   :  { %599 = vmatmul.mubr.msk.f32.vlgmr.msra.gmra.mrb[0].mxu1 %vm193_vm1, %v166_v37  ;;  %653 = vmatpush3.bf16.msra.mxu0 %v757_v3 }
  0xec   :  { %601 = vmatprep.mubr.msk.f32.mxu1 %vm193_vm1, %v167_v38  ;;  %619 = vmatprep.mubr.msk.f32.mxu0 %vm695_vm2, %v696_v40 }
  0xee   :  { %620 = vmatmul.mubr.msk.f32.vlgmr.msra.gmra.mrb[6].mxu0 %vm63_vm0, %v295_v42 }
  0xef   :  { %602 = vmatmul.mubr.msk.f32.gmra.mrb[2].mxu1 %vm193_vm1, %v168_v39 }
  0xf0   :  { %630 = vmatprep.mubr.msk.f32.mxu1 %vm695_vm2, %v696_v40 }
 0x1bd   :  { %v366_v62 = vpop.f32.mrb[4].mxu0 }
 0x1be   :  { %v600_v45 = vpop.f32.mrb[0].mxu1  ;;  %v614_v63 = vpop.f32.mrb[5].mxu0 }
 0x1bf   :  { %v278_v46 = vadd.f32 %v600_v45, %v181_v43  ;;  %v272_v47 = vpop.f32.mrb[1].mxu1 }
 0x1c0   :  { %v273_v48 = vadd.f32 %v272_v47, %v176_v44 }
 0x1c1   :  { %v292_v49 = vmax.f32 %v278_v46, 0.0  ;;  %v439_v0 = vpop.f32.mrb[6].mxu0 }
 0x1c2   :  { %v291_v51 = vmax.f32 %v273_v48, 0.0  ;;  %v603_v52 = vpop.f32.mrb[2].mxu1  ;;  %v440_v1 = vadd.f32 %v439_v0, %v366_v62  ;;  %v621_v2 = vpop.f32.mrb[7].mxu0 }
 0x1c3   :  { %v288_v54 = vadd.f32 %v603_v52, %v191_v50  ;;  %v282_v55 = vpop.f32.mrb[3].mxu1 }
 0x1c4   :  { %v655_v56 = vpack.c.bf16 %v292_v49, %v291_v51  ;;  %v283_v57 = vadd.f32 %v282_v55, %v186_v53 }
 0x1c5   :  { %v294_v58 = vmax.f32 %v288_v54, 0.0 }
 0x1c6   :  { %v293_v59 = vmax.f32 %v283_v57, 0.0  ;;  %656 = vmatpush3.bf16.msra.mxu1 %v655_v56 }
 0x1c7   :  { %657 = vmatprep.subr.bf16.mxu1 %v694_v17 }
 0x1c8   :  { %v658_v60 = vpack.c.bf16 %v294_v58, %v293_v59 }
 0x1ca   :  { %659 = vmatpush3.bf16.msra.mxu1 %v658_v60 }
 0x1cd   :  { %631 = vmatmul.mubr.msk.f32.vlgmr.msra.gmra.mrb[4].mxu1 %vm193_vm1, %v443_v61 }
 0x2a0   :  { %v513_v3 = vpop.f32.mrb[4].mxu1 }
 0x2a1   :  { %v517_v4 = vadd.f32 %v513_v3, %v440_v1  ;;  %v632_v5 = vpop.f32.mrb[5].mxu1 }
 0x2a3   :  { %v524_v7 = vadd.f32 %v522_v6, %v517_v4 }
 0x2a5   :  { %667 = vtanh.f32 %v524_v7 }
 0x2af   :  { %v668_v8 = vpop.eup %667 }
 0x2b0   :  { %v526_v9 = vmul.f32 1.5, %v668_v8 }
 0x2b2   :  { %527 = vst [vmem:[#allocation2] sm:$0xff] %v526_v9 }
 0x2b3   :  { %680 = shalt.err (!%p677_p4)
}
 0x2b4   :  { %s681_s27 = scalar_lea.hbm %s856_s9, 128 }
 0x2b5   :  { %p682_p5 = scmp.ne.s32.totalorder %s856_s9, %s681_s27  ;;  %p685_p6 = scmp.lt.u32.totalorder %s681_s27, %s856_s9 }
 0x2b7   :  { %p687_p7 = pnand %p685_p6, %p682_p5 }
 0x2b9   :  { %690 = shalt.err (!%p687_p7)
}
 0x2ba   :  { %537 = dma.vmem_to_hbm [thread:$0]  %s535_s24, 128, %s856_s9, [#allocation3]  }
 0x2bb   :  { %691 = dma.done.wait [#allocation3], 128  }
 0x2bc   :  { %692 = vsyncadd [#allocation3], 4294967168 }
 0x2bd   :  { %541 = vsyncpa [#allocation3], 1 }

</bundles_post_ra>
